<compile_context>
chip_gen: v7x
topology: tpu7x:2x2x1
jax: 0.10.0
libtpu: 0.0.40
codegen_flags: <defaults>
</compile_context>

<pallas_src>
import functools
import math
from typing import Dict, Tuple

import jax
import jax.numpy as jnp
from jax.experimental import pallas as pl
from jax.experimental.pallas import tpu as pltpu


# ----------------------------- Pallas kernel -------------------------------

def _obs_decoder_kernel(x_ref,
                        w1_ref, b1_ref,
                        w2_ref, b2_ref,
                        w3_ref, b3_ref,
                        wh_ref, bh_ref,
                        out_ref):
    # Input arrives as f32 (no separate cast pass in the wrapper); cast to
    # bf16 on the VPU right before the MXU.  All matmuls accumulate in f32;
    # bias-add / ReLU run in f32 on the VPU (safe on v5e: no bf16 VALU there).
    h = x_ref[...].astype(jnp.bfloat16)

    h = jnp.dot(h, w1_ref[...], preferred_element_type=jnp.float32)
    h = jnp.maximum(h + b1_ref[...], 0.0).astype(jnp.bfloat16)

    h = jnp.dot(h, w2_ref[...], preferred_element_type=jnp.float32)
    h = jnp.maximum(h + b2_ref[...], 0.0).astype(jnp.bfloat16)

    h = jnp.dot(h, w3_ref[...], preferred_element_type=jnp.float32)
    h = jnp.maximum(h + b3_ref[...], 0.0).astype(jnp.bfloat16)

    # Fused decoding heads: one lane-dense 128-wide output (lin ++ vis ++ zero
    # padding), sliced apart in the JAX wrapper -> unmasked full-lane store.
    out_ref[...] = (jnp.dot(h, wh_ref[...],
                            preferred_element_type=jnp.float32)
                    + bh_ref[...]).astype(out_ref.dtype)


# ------------------------------- wrapper ------------------------------------

def _round_up(x: int, m: int) -> int:
    return ((x + m - 1) // m) * m


@functools.partial(jax.jit, static_argnames=("obs_shapes",))
def obs_decoder_forward(encoded_obs: jnp.ndarray,
                        params: Dict[str, jnp.ndarray],
                        obs_shapes: Tuple[Tuple[str, Tuple[int, ...]], ...]):
    """Decode (batch, seq, d_model) latents into the observation space dict."""
    batch, seq, d_model = encoded_obs.shape
    n_rows = batch * seq

    (lin_name, lin_shape), (vis_name, vis_shape) = obs_shapes
    lin_flat = math.prod(lin_shape)          # static python ints (no tracing)
    vis_flat = math.prod(vis_shape)
    head_pad = params["wh"].shape[1]         # fused, 128-aligned head width

    # Row tiling: large tiles when there is enough work (pipelined against the
    # MXU chain); otherwise one padded tile.  16-row alignment keeps bf16
    # sublane tiling happy; TM=512 keeps the per-tile working set (~1 MiB)
    # well under the scoped-VMEM default on every chip generation.
    tm = 512 if n_rows >= 512 else _round_up(max(n_rows, 16), 16)
    n_rows_p = _round_up(n_rows, tm)
    num_tiles = n_rows_p // tm

    x = encoded_obs.reshape(n_rows, d_model)          # f32, no copy
    if n_rows_p != n_rows:
        x = jnp.pad(x, ((0, n_rows_p - n_rows), (0, 0)))

    def row_spec(cols):
        return pl.BlockSpec((tm, cols), lambda i: (i, 0))

    def const_spec(shape):
        # Weights / biases: same block every grid step -> stay VMEM-resident.
        return pl.BlockSpec(shape, lambda i: (0, 0))

    args = (
        x,
        params["w1"], params["b1"],
        params["w2"], params["b2"],
        params["w3"], params["b3"],
        params["wh"], params["bh"],
    )
    in_specs = [row_spec(d_model)] + [const_spec(a.shape) for a in args[1:]]

    u1 = params["w1"].shape[1]
    u2 = params["w2"].shape[1]
    u3 = params["w3"].shape[1]
    flops = 2 * n_rows_p * (d_model * u1 + u1 * u2 + u2 * u3 + u3 * head_pad)
    bytes_accessed = (
        int(x.size) * x.dtype.itemsize
        + sum(int(a.size) * a.dtype.itemsize for a in args[1:])
        + n_rows_p * head_pad * 4)

    out = pl.pallas_call(
        _obs_decoder_kernel,
        out_shape=jax.ShapeDtypeStruct((n_rows_p, head_pad), jnp.float32),
        grid=(num_tiles,),
        in_specs=in_specs,
        out_specs=row_spec(head_pad),
        compiler_params=pltpu.CompilerParams(
            dimension_semantics=("parallel",)),
        cost_estimate=pl.CostEstimate(
            flops=flops, transcendentals=0, bytes_accessed=bytes_accessed),
    )(*args)

    out_lin = out[:n_rows, :lin_flat]
    out_vis = out[:n_rows, lin_flat:lin_flat + vis_flat]
    return {
        lin_name: out_lin.reshape((batch, seq) + lin_shape),
        vis_name: out_vis.reshape((batch, seq) + vis_shape),
    }


# --------------------------- parameter creation -----------------------------

def init_params(key, d_model: int, units, lin_flat: int, vis_flat: int):
    """Synthetic weights matching nn.Linear shapes (stored (in, out)).

    MXU operands (w1..w3, fused head weight) are bf16; biases stay f32 since
    the bias-add / ReLU epilogue runs in f32 after accumulation.
    """
    head_pad = _round_up(lin_flat + vis_flat, 128)
    dims = [d_model] + list(units)
    keys = jax.random.split(key, 2 * len(units) + 4)
    params = {}
    ki = 0
    for li, (din, dout) in enumerate(zip(dims[:-1], dims[1:]), start=1):
        scale = 1.0 / math.sqrt(din)
        params[f"w{li}"] = (jax.random.uniform(keys[ki], (din, dout),
                                               jnp.float32, -1.0, 1.0)
                            * scale).astype(jnp.bfloat16)
        params[f"b{li}"] = (jax.random.uniform(keys[ki + 1], (1, dout),
                                               jnp.float32, -1.0, 1.0) * scale)
        ki += 2
    dlast = dims[-1]
    scale = 1.0 / math.sqrt(dlast)
    wh_lin = jax.random.uniform(keys[ki], (dlast, lin_flat),
                                jnp.float32, -1.0, 1.0) * scale
    bh_lin = jax.random.uniform(keys[ki + 1], (1, lin_flat),
                                jnp.float32, -1.0, 1.0) * scale
    wh_vis = jax.random.uniform(keys[ki + 2], (dlast, vis_flat),
                                jnp.float32, -1.0, 1.0) * scale
    bh_vis = jax.random.uniform(keys[ki + 3], (1, vis_flat),
                                jnp.float32, -1.0, 1.0) * scale
    # Fuse the two per-space heads into one lane-dense (128-padded) projection.
    pad = head_pad - (lin_flat + vis_flat)
    wh = jnp.concatenate(
        [wh_lin, wh_vis, jnp.zeros((dlast, pad), jnp.float32)], axis=1)
    bh = jnp.concatenate(
        [bh_lin, bh_vis, jnp.zeros((1, pad), jnp.float32)], axis=1)
    params["wh"] = wh.astype(jnp.bfloat16)
    params["bh"] = bh
    return params


# pure-JAX reference (same bf16 operand / f32 accumulation math as the kernel)
def reference_forward(x, params, obs_shapes):
    b, s, d = x.shape
    h = x.reshape(b * s, d).astype(jnp.bfloat16)
    for li in (1, 2, 3):
        h = jnp.dot(h, params[f"w{li}"], preferred_element_type=jnp.float32)
        h = jnp.maximum(h + params[f"b{li}"], 0.0).astype(jnp.bfloat16)
    out = (jnp.dot(h, params["wh"], preferred_element_type=jnp.float32)
           + params["bh"])
    (lin_name, lin_shape), (vis_name, vis_shape) = obs_shapes
    lin_flat = math.prod(lin_shape)
    vis_flat = math.prod(vis_shape)
    return {
        lin_name: out[:, :lin_flat].reshape((b, s) + lin_shape),
        vis_name: out[:, lin_flat:lin_flat + vis_flat].reshape(
            (b, s) + vis_shape),
    }


# --------------------------------- main -------------------------------------

if __name__ == "__main__":
    batch, seq, d_model = 2, 8, 32
    units = (256, 128, 128)                     # MlpConfiguration 'units'
    # MultiSpace obs_space with two sub-spaces: a linear one and a visual one.
    obs_shapes = (("linear", (24,)), ("visual", (1, 8, 8)))
    lin_flat = math.prod((24,))
    vis_flat = math.prod((1, 8, 8))

    key = jax.random.PRNGKey(0)
    k_params, k_obs = jax.random.split(key)
    params = init_params(k_params, d_model, units, lin_flat, vis_flat)
    encoded_obs = jax.random.normal(k_obs, (batch, seq, d_model), jnp.float32)

    decoded = obs_decoder_forward(encoded_obs, params, obs_shapes)
    jax.block_until_ready(decoded)

    ref = reference_forward(encoded_obs, params, obs_shapes)
    for name in ("linear", "visual"):
        assert decoded[name].shape == ref[name].shape
        assert jnp.allclose(decoded[name], ref[name], atol=1e-2, rtol=1e-2)

    print("KERNEL_OK")
</pallas_src>

<mosaic_0001>
module attributes {stable_mosaic.version = 11 : i64} {
  func.func @_obs_decoder_kernel(%arg0: i32, %arg1: memref<16x32xf32, #tpu.memory_space<vmem>>, %arg2: memref<32x256xbf16, #tpu.memory_space<vmem>>, %arg3: memref<1x256xf32, #tpu.memory_space<vmem>>, %arg4: memref<256x128xbf16, #tpu.memory_space<vmem>>, %arg5: memref<1x128xf32, #tpu.memory_space<vmem>>, %arg6: memref<128x128xbf16, #tpu.memory_space<vmem>>, %arg7: memref<1x128xf32, #tpu.memory_space<vmem>>, %arg8: memref<128x128xbf16, #tpu.memory_space<vmem>>, %arg9: memref<1x128xf32, #tpu.memory_space<vmem>>, %arg10: memref<16x128xf32, #tpu.memory_space<vmem>>) attributes {dimension_semantics = [#tpu.dimension_semantics<parallel>], iteration_bounds = array<i64: 1>, scalar_prefetch = 0 : i64, scratch_operands = 0 : i64, tpu.core_type = #tpu.core_type<tc>, window_params = [{transform_indices = @transform_0, window_bounds = array<i64: 16, 32>}, {pipeline_mode = #tpu.pipeline_mode<synchronous>, transform_indices = @transform_1, window_bounds = array<i64: 32, 256>}, {pipeline_mode = #tpu.pipeline_mode<synchronous>, transform_indices = @transform_2, window_bounds = array<i64: 1, 256>}, {pipeline_mode = #tpu.pipeline_mode<synchronous>, transform_indices = @transform_3, window_bounds = array<i64: 256, 128>}, {pipeline_mode = #tpu.pipeline_mode<synchronous>, transform_indices = @transform_4, window_bounds = array<i64: 1, 128>}, {pipeline_mode = #tpu.pipeline_mode<synchronous>, transform_indices = @transform_5, window_bounds = array<i64: 128, 128>}, {pipeline_mode = #tpu.pipeline_mode<synchronous>, transform_indices = @transform_6, window_bounds = array<i64: 1, 128>}, {pipeline_mode = #tpu.pipeline_mode<synchronous>, transform_indices = @transform_7, window_bounds = array<i64: 128, 128>}, {pipeline_mode = #tpu.pipeline_mode<synchronous>, transform_indices = @transform_8, window_bounds = array<i64: 1, 128>}, {transform_indices = @transform_9, window_bounds = array<i64: 16, 128>}]} {
    %c0 = arith.constant 0 : index
    %c0_0 = arith.constant 0 : index
    %0 = vector.load %arg1[%c0, %c0_0] : memref<16x32xf32, #tpu.memory_space<vmem>>, vector<16x32xf32>
    %1 = arith.truncf %0 : vector<16x32xf32> to vector<16x32xbf16>
    %c0_1 = arith.constant 0 : index
    %c0_2 = arith.constant 0 : index
    %2 = vector.load %arg2[%c0_1, %c0_2] : memref<32x256xbf16, #tpu.memory_space<vmem>>, vector<32x256xbf16>
    %cst = arith.constant dense<0.000000e+00> : vector<16x256xf32>
    %3 = tpu.matmul %1, %2, %cst {dimension_numbers = #tpu.dot_dimension_numbers<[1], [0], [0], [1], [0, 0, 1, 1], [], []>} : vector<16x32xbf16>, vector<32x256xbf16>, vector<16x256xf32> -> vector<16x256xf32>
    %c0_3 = arith.constant 0 : index
    %c0_4 = arith.constant 0 : index
    %4 = vector.load %arg3[%c0_3, %c0_4] : memref<1x256xf32, #tpu.memory_space<vmem>>, vector<1x256xf32>
    %5 = vector.broadcast %4 : vector<1x256xf32> to vector<16x256xf32>
    %6 = arith.addf %3, %5 : vector<16x256xf32>
    %cst_5 = arith.constant 0.000000e+00 : f32
    %7 = vector.broadcast %cst_5 : f32 to vector<16x256xf32>
    %8 = arith.maximumf %6, %7 : vector<16x256xf32>
    %9 = arith.truncf %8 : vector<16x256xf32> to vector<16x256xbf16>
    %c0_6 = arith.constant 0 : index
    %c0_7 = arith.constant 0 : index
    %10 = vector.load %arg4[%c0_6, %c0_7] : memref<256x128xbf16, #tpu.memory_space<vmem>>, vector<256x128xbf16>
    %cst_8 = arith.constant dense<0.000000e+00> : vector<16x128xf32>
    %11 = tpu.matmul %9, %10, %cst_8 {dimension_numbers = #tpu.dot_dimension_numbers<[1], [0], [0], [1], [0, 0, 1, 1], [], []>} : vector<16x256xbf16>, vector<256x128xbf16>, vector<16x128xf32> -> vector<16x128xf32>
    %c0_9 = arith.constant 0 : index
    %c0_10 = arith.constant 0 : index
    %12 = vector.load %arg5[%c0_9, %c0_10] : memref<1x128xf32, #tpu.memory_space<vmem>>, vector<1x128xf32>
    %13 = vector.broadcast %12 : vector<1x128xf32> to vector<16x128xf32>
    %14 = arith.addf %11, %13 : vector<16x128xf32>
    %cst_11 = arith.constant 0.000000e+00 : f32
    %15 = vector.broadcast %cst_11 : f32 to vector<16x128xf32>
    %16 = arith.maximumf %14, %15 : vector<16x128xf32>
    %17 = arith.truncf %16 : vector<16x128xf32> to vector<16x128xbf16>
    %c0_12 = arith.constant 0 : index
    %c0_13 = arith.constant 0 : index
    %18 = vector.load %arg6[%c0_12, %c0_13] : memref<128x128xbf16, #tpu.memory_space<vmem>>, vector<128x128xbf16>
    %cst_14 = arith.constant dense<0.000000e+00> : vector<16x128xf32>
    %19 = tpu.matmul %17, %18, %cst_14 {dimension_numbers = #tpu.dot_dimension_numbers<[1], [0], [0], [1], [0, 0, 1, 1], [], []>} : vector<16x128xbf16>, vector<128x128xbf16>, vector<16x128xf32> -> vector<16x128xf32>
    %c0_15 = arith.constant 0 : index
    %c0_16 = arith.constant 0 : index
    %20 = vector.load %arg7[%c0_15, %c0_16] : memref<1x128xf32, #tpu.memory_space<vmem>>, vector<1x128xf32>
    %21 = vector.broadcast %20 : vector<1x128xf32> to vector<16x128xf32>
    %22 = arith.addf %19, %21 : vector<16x128xf32>
    %cst_17 = arith.constant 0.000000e+00 : f32
    %23 = vector.broadcast %cst_17 : f32 to vector<16x128xf32>
    %24 = arith.maximumf %22, %23 : vector<16x128xf32>
    %25 = arith.truncf %24 : vector<16x128xf32> to vector<16x128xbf16>
    %c0_18 = arith.constant 0 : index
    %c0_19 = arith.constant 0 : index
    %26 = vector.load %arg8[%c0_18, %c0_19] : memref<128x128xbf16, #tpu.memory_space<vmem>>, vector<128x128xbf16>
    %cst_20 = arith.constant dense<0.000000e+00> : vector<16x128xf32>
    %27 = tpu.matmul %25, %26, %cst_20 {dimension_numbers = #tpu.dot_dimension_numbers<[1], [0], [0], [1], [0, 0, 1, 1], [], []>} : vector<16x128xbf16>, vector<128x128xbf16>, vector<16x128xf32> -> vector<16x128xf32>
    %c0_21 = arith.constant 0 : index
    %c0_22 = arith.constant 0 : index
    %28 = vector.load %arg9[%c0_21, %c0_22] : memref<1x128xf32, #tpu.memory_space<vmem>>, vector<1x128xf32>
    %29 = vector.broadcast %28 : vector<1x128xf32> to vector<16x128xf32>
    %30 = arith.addf %27, %29 : vector<16x128xf32>
    %c0_23 = arith.constant 0 : index
    %c0_24 = arith.constant 0 : index
    %31 = vector.load %arg10[%c0_23, %c0_24] : memref<16x128xf32, #tpu.memory_space<vmem>>, vector<16x128xf32>
    tpu.vector_store %arg10[%c0_23, %c0_24], %30 {strides = array<i32>} : memref<16x128xf32, #tpu.memory_space<vmem>>, vector<16x128xf32>,
    return
  }
  func.func @transform_0(%arg0: i32) -> (i32, i32) {
    %c0_i32 = arith.constant 0 : i32
    %c0_i32_0 = arith.constant 0 : i32
    return %arg0, %c0_i32 : i32, i32
  }
  func.func @transform_1(%arg0: i32) -> (i32, i32) {
    %c0_i32 = arith.constant 0 : i32
    %c0_i32_0 = arith.constant 0 : i32
    %c0_i32_1 = arith.constant 0 : i32
    return %c0_i32, %c0_i32_0 : i32, i32
  }
  func.func @transform_2(%arg0: i32) -> (i32, i32) {
    %c0_i32 = arith.constant 0 : i32
    %c0_i32_0 = arith.constant 0 : i32
    %c0_i32_1 = arith.constant 0 : i32
    return %c0_i32, %c0_i32_0 : i32, i32
  }
  func.func @transform_3(%arg0: i32) -> (i32, i32) {
    %c0_i32 = arith.constant 0 : i32
    %c0_i32_0 = arith.constant 0 : i32
    %c0_i32_1 = arith.constant 0 : i32
    return %c0_i32, %c0_i32_0 : i32, i32
  }
  func.func @transform_4(%arg0: i32) -> (i32, i32) {
    %c0_i32 = arith.constant 0 : i32
    %c0_i32_0 = arith.constant 0 : i32
    %c0_i32_1 = arith.constant 0 : i32
    return %c0_i32, %c0_i32_0 : i32, i32
  }
  func.func @transform_5(%arg0: i32) -> (i32, i32) {
    %c0_i32 = arith.constant 0 : i32
    %c0_i32_0 = arith.constant 0 : i32
    %c0_i32_1 = arith.constant 0 : i32
    return %c0_i32, %c0_i32_0 : i32, i32
  }
  func.func @transform_6(%arg0: i32) -> (i32, i32) {
    %c0_i32 = arith.constant 0 : i32
    %c0_i32_0 = arith.constant 0 : i32
    %c0_i32_1 = arith.constant 0 : i32
    return %c0_i32, %c0_i32_0 : i32, i32
  }
  func.func @transform_7(%arg0: i32) -> (i32, i32) {
    %c0_i32 = arith.constant 0 : i32
    %c0_i32_0 = arith.constant 0 : i32
    %c0_i32_1 = arith.constant 0 : i32
    return %c0_i32, %c0_i32_0 : i32, i32
  }
  func.func @transform_8(%arg0: i32) -> (i32, i32) {
    %c0_i32 = arith.constant 0 : i32
    %c0_i32_0 = arith.constant 0 : i32
    %c0_i32_1 = arith.constant 0 : i32
    return %c0_i32, %c0_i32_0 : i32, i32
  }
  func.func @transform_9(%arg0: i32) -> (i32, i32) {
    %c0_i32 = arith.constant 0 : i32
    %c0_i32_0 = arith.constant 0 : i32
    return %arg0, %c0_i32 : i32, i32
  }
}

</mosaic_0001>

<bundles_post_ra>
// kernel: obs_decoder_forward.1
= control target key start
LH: loop header
LB: loop body
LE: loop exit
PB: predicated region body
PF: predicated region fallthrough
CT: control target
= control target key end

     0   :  { %14 = vsyncpa [#allocation3], 0  ;;  %s1067_s0 = inlined_call_operand.hbm [shape: f32[16,32], index: 0, kind: input, shape index: {}]   ;;  %s1068_s1 = inlined_call_operand.hbm [shape: bf16[32,256], index: 1, kind: input, shape index: {}]   ;;  %s1069_s2 = inlined_call_operand.vmem [shape: f32[1,256], index: 2, kind: input, shape index: {}]   ;;  %s1070_s3 = inlined_call_operand.hbm [shape: bf16[256,128], index: 3, kind: input, shape index: {}]   ;;  %s1071_s4 = inlined_call_operand.vmem [shape: f32[1,128], index: 4, kind: input, shape index: {}]   ;;  %s1072_s5 = inlined_call_operand.hbm [shape: bf16[128,128], index: 5, kind: input, shape index: {}]   ;;  %s1073_s6 = inlined_call_operand.vmem [shape: f32[1,128], index: 6, kind: input, shape index: {}]   ;;  %s1074_s7 = inlined_call_operand.hbm [shape: bf16[128,128], index: 7, kind: input, shape index: {}]   ;;  %s1075_s8 = inlined_call_operand.vmem [shape: f32[1,128], index: 8, kind: input, shape index: {}]   ;;  %s1076_s9 = inlined_call_operand.vmem [shape: f32[16,128], index: 9, kind: output, shape index: {}]  }
   0x1   :  { %15 = vsyncpa [#allocation5], 0 }
   0x2   :  { %16 = vsyncpa [#allocation8], 0  ;;  %s894_s30 = smov [#allocation4]   ;;  %s778_s13 = scalar_lea.hbm %s1068_s1, 512 }
   0x3   :  { %s34_s10 = sshll.u32 %s894_s30, 4  ;;  %p779_p0 = scmp.ne.s32.totalorder %s1068_s1, %s778_s13  ;;  %s35_s10 = int_to_ptr.vmem [resolvable:$true] %s34_s10 }
   0x4   :  { %p782_p1 = scmp.lt.u32.totalorder %s778_s13, %s1068_s1 }
   0x6   :  { %p784_p2 = pnand %p782_p1, %p779_p0 }
   0x8   :  { %787 = shalt.err (!%p784_p2)
}
   0x9   :  { %s788_s18 = scalar_lea.vmem %s35_s10, 512  ;;  %p793_p4 = scmp.lt.s32.totalorder %s35_s10, %s35_s10 }
   0xa   :  { %p789_p3 = scmp.ne.s32.totalorder %s35_s10, %s788_s18  ;;  %p794_p5 = scmp.lt.s32.totalorder %s788_s18, %s788_s18 }
   0xc   :  { %p795_p6 = por %p794_p5, %p793_p4 }
   0xe   :  { %p796_p7 = pnand %p795_p6, %p789_p3 }
  0x10   :  { %799 = shalt.err (!%p796_p7)
}
  0x11   :  { %s895_s19 = smov 128   ;;  %s896_s20 = smov 8  }
  0x12   :  { %40 = dma.hbm_to_vmem [thread:$0]  %s1068_s1, 512, %s35_s10, [#allocation5], %s895_s19, %s895_s19, %s896_s20  }
  0x13   :  { %s897_s23 = smov [#allocation7]   ;;  %s898_s25 = smov [#allocation2]  }
  0x14   :  { %s62_s24 = sshll.u32 %s897_s23, 4  ;;  %s22_s26 = sshll.u32 %s898_s25, 4  ;;  %s63_s24 = int_to_ptr.vmem [resolvable:$true] %s62_s24  ;;  %s23_s26 = int_to_ptr.vmem [resolvable:$true] %s22_s26 }
  0x15   :  { %s800_s29 = scalar_lea.hbm %s1072_s5, 1024 }
  0x16   :  { %p801_p8 = scmp.ne.s32.totalorder %s1072_s5, %s800_s29  ;;  %p804_p9 = scmp.lt.u32.totalorder %s800_s29, %s1072_s5 }
  0x18   :  { %p806_p10 = pnand %p804_p9, %p801_p8 }
  0x1a   :  { %809 = shalt.err (!%p806_p10)
}
  0x1b   :  { %s810_s1 = scalar_lea.vmem %s63_s24, 1024  ;;  %p815_p12 = scmp.lt.s32.totalorder %s63_s24, %s63_s24 }
  0x1c   :  { %p811_p11 = scmp.ne.s32.totalorder %s63_s24, %s810_s1  ;;  %p816_p13 = scmp.lt.s32.totalorder %s810_s1, %s810_s1 }
  0x1e   :  { %p817_p0 = por %p816_p13, %p815_p12 }
  0x20   :  { %p818_p1 = pnand %p817_p0, %p811_p11 }
  0x22   :  { %821 = shalt.err (!%p818_p1)
}
  0x23   :  { %s899_s10 = smov 64   ;;  %s900_s14 = smov 4  }
  0x24   :  { %68 = dma.hbm_to_vmem [thread:$0]  %s1072_s5, 1024, %s63_s24, [#allocation8], %s899_s10, %s899_s10, %s900_s14  }
  0x25   :  { %s822_s21 = scalar_lea.hbm %s1067_s0, 256 }
  0x26   :  { %p823_p2 = scmp.ne.s32.totalorder %s1067_s0, %s822_s21  ;;  %p826_p3 = scmp.lt.u32.totalorder %s822_s21, %s1067_s0 }
  0x28   :  { %p828_p4 = pnand %p826_p3, %p823_p2 }
  0x2a   :  { %831 = shalt.err (!%p828_p4)
}
  0x2b   :  { %s832_s28 = scalar_lea.vmem %s23_s26, 256  ;;  %p837_p6 = scmp.lt.s32.totalorder %s23_s26, %s23_s26 }
  0x2c   :  { %p833_p5 = scmp.ne.s32.totalorder %s23_s26, %s832_s28  ;;  %p838_p7 = scmp.lt.s32.totalorder %s832_s28, %s832_s28 }
  0x2e   :  { %p839_p8 = por %p838_p7, %p837_p6 }
  0x30   :  { %p840_p9 = pnand %p839_p8, %p833_p5 }
  0x32   :  { %843 = shalt.err (!%p840_p9)
}
  0x33   :  { %28 = dma.hbm_to_vmem [thread:$0]  %s1067_s0, 256, %s23_s26, [#allocation3], %s895_s19, %s895_s19, %s896_s20  }
  0x34   :  { %s901_s29 = smov [#allocation6]   ;;  %s902_s11 = smov [#allocation9]  }
  0x35   :  { %s48_s30 = sshll.u32 %s901_s29, 4  ;;  %s76_s12 = sshll.u32 %s902_s11, 4  ;;  %s49_s30 = int_to_ptr.vmem [resolvable:$true] %s48_s30  ;;  %s77_s12 = int_to_ptr.vmem [resolvable:$true] %s76_s12 }
  0x36   :  { %s844_s15 = scalar_lea.hbm %s1070_s3, 2048 }
  0x37   :  { %p845_p10 = scmp.ne.s32.totalorder %s1070_s3, %s844_s15  ;;  %p848_p11 = scmp.lt.u32.totalorder %s844_s15, %s1070_s3 }
  0x39   :  { %p850_p12 = pnand %p848_p11, %p845_p10 }
  0x3b   :  { %853 = shalt.err (!%p850_p12)
}
  0x3c   :  { %s854_s0 = scalar_lea.vmem %s49_s30, 2048  ;;  %p859_p0 = scmp.lt.s32.totalorder %s49_s30, %s49_s30 }
  0x3d   :  { %p855_p13 = scmp.ne.s32.totalorder %s49_s30, %s854_s0  ;;  %p860_p1 = scmp.lt.s32.totalorder %s854_s0, %s854_s0 }
  0x3f   :  { %p861_p2 = por %p860_p1, %p859_p0 }
  0x41   :  { %p862_p3 = pnand %p861_p2, %p855_p13 }
  0x43   :  { %865 = shalt.err (!%p862_p3)
}
  0x44   :  { %54 = dma.hbm_to_vmem [thread:$0]  %s1070_s3, 2048, %s49_s30, [#allocation5], %s899_s10, %s899_s10, %s900_s14  }
  0x45   :  { %s866_s23 = scalar_lea.hbm %s1074_s7, 1024 }
  0x46   :  { %p867_p4 = scmp.ne.s32.totalorder %s1074_s7, %s866_s23  ;;  %p870_p5 = scmp.lt.u32.totalorder %s866_s23, %s1074_s7 }
  0x48   :  { %p872_p6 = pnand %p870_p5, %p867_p4 }
  0x4a   :  { %875 = shalt.err (!%p872_p6)
}
  0x4b   :  { %s876_s24 = scalar_lea.vmem %s77_s12, 1024  ;;  %p881_p8 = scmp.lt.s32.totalorder %s77_s12, %s77_s12 }
  0x4c   :  { %p877_p7 = scmp.ne.s32.totalorder %s77_s12, %s876_s24  ;;  %p882_p9 = scmp.lt.s32.totalorder %s876_s24, %s876_s24 }
  0x4e   :  { %p883_p10 = por %p882_p9, %p881_p8 }
  0x50   :  { %p884_p11 = pnand %p883_p10, %p877_p7 }
  0x52   :  { %887 = shalt.err (!%p884_p11)
}
  0x53   :  { %82 = dma.hbm_to_vmem [thread:$0]  %s1074_s7, 1024, %s77_s12, [#allocation8], %s899_s10, %s899_s10, %s900_s14  }
  0x54   :  { %888 = dma.done.wait [#allocation3], 256  }
  0x55   :  { %889 = vsyncadd [#allocation3], 4294967040 }
  0x56   :  { %890 = dma.done.wait [#allocation5], 2560  }
  0x57   :  { %891 = vsyncadd [#allocation5], 4294964736 }
  0x58   :  { %892 = dma.done.wait [#allocation8], 2048  }
  0x59   :  { %893 = vsyncadd [#allocation8], 4294965248  ;;  %v903_v0 = vmov 0   ;;  %v740_v1 = vld [vmem:[#allocation4 + $0x4] ss:$8 sps:$4 sm:$0xff]   ;;  %v101_v5 = vld [vmem:[#allocation2] sm:$0xff]  ;;  %v110_v30 = vlaneseq }
  0x5a   :  { %176 = vmatprep.mubr.bf16.mxu0 %v903_v0  ;;  %v742_v2 = vld [vmem:[#allocation4] ss:$8 sps:$4 sm:$0xff]   ;;  %144 = vmatprep.subr.bf16.mxu0 %v740_v1  ;;  %v743_v3 = vld [vmem:[#allocation4 + $0x14] ss:$8 sps:$4 sm:$0xff]   ;;  %v745_v4 = vld [vmem:[#allocation4 + $0x10] ss:$8 sps:$4 sm:$0xff]  }
  0x5b   :  { %145 = vmatpush1.bf16.msra.mxu0 %v742_v2  ;;  %v102_v6 = vld [vmem:[#allocation2 + $0x8] sm:$0xff]  ;;  %v746_v7 = vld [vmem:[#allocation6 + $0x40] sm:$0xff]   ;;  %v748_v10 = vld [vmem:[#allocation6 + $0x48] sm:$0xff]   ;;  %vm140_vm0 = vcmask 261120   ;;  %v904_v25 = vmov 0.0   ;;  %v111_v31 = vshrl.u32 %v110_v30, 7 }
  0x5c   :  { %146 = vmatprep.subr.bf16.mxu0 %v743_v3  ;;  %v747_v8 = vld [vmem:[#allocation6] sm:$0xff]   ;;  %v103_v9 = vpack.c.bf16 %v102_v6, %v101_v5  ;;  %648 = vmatprep.subr.bf16.mxu1 %v746_v7  ;;  %v749_v11 = vld [vmem:[#allocation6 + $0x8] sm:$0xff]   ;;  %v750_v12 = vld [vmem:[#allocation6 + $0x50] sm:$0xff]   ;;  %vm905_vm1 = vmmov 0  }
  0x5d   :  { %649 = vmatpush3.bf16.msra.mxu1 %v747_v8  ;;  %v751_v13 = vld [vmem:[#allocation6 + $0x10] sm:$0xff]   ;;  %v752_v14 = vld [vmem:[#allocation6 + $0x58] sm:$0xff]   ;;  %v754_v16 = vld [vmem:[#allocation6 + $0x60] sm:$0xff]   ;;  %v112_v32 = vsub.s32 0, %v111_v31  ;;  %v116_v34 = vsub.s32 1, %v111_v31 }
  0x5e   :  { %650 = vmatprep.subr.bf16.mxu1 %v748_v10  ;;  %v753_v15 = vld [vmem:[#allocation6 + $0x18] sm:$0xff]   ;;  %v755_v17 = vld [vmem:[#allocation6 + $0x20] sm:$0xff]   ;;  %v756_v18 = vld [vmem:[#allocation6 + $0x68] sm:$0xff]  }
  0x5f   :  { %147 = vmatpush1.bf16.msra.mxu0 %v745_v4  ;;  %v757_v19 = vld [vmem:[#allocation6 + $0x28] sm:$0xff]   ;;  %v758_v20 = vld [vmem:[#allocation6 + $0x70] sm:$0xff]   ;;  %v760_v22 = vld [vmem:[#allocation6 + $0x78] sm:$0xff]  }
  0x60   :  { %v759_v21 = vld [vmem:[#allocation6 + $0x30] sm:$0xff]   ;;  %v761_v23 = vld [vmem:[#allocation6 + $0x38] sm:$0xff]   ;;  %v762_v24 = vld [vmem:[#allocation7] sm:$0xff]   ;;  %688 = vmatprep.subr.bf16.mxu0 %v904_v25 }
  0x61   :  { %651 = vmatpush3.bf16.msra.mxu1 %v749_v11  ;;  %v763_v26 = vld [vmem:[#allocation7 + $0x8] sm:$0xff]   ;;  %v764_v27 = vld [vmem:[#allocation7 + $0x10] sm:$0xff]   ;;  %v765_v28 = vld [vmem:[#allocation7 + $0x18] sm:$0xff]  }
  0x62   :  { %612 = vmatmul.mubr.msk.bf16.vlgmr.msra.gmra.mrb[0].mxu0 %vm140_vm0, %v103_v9  ;;  %652 = vmatprep.subr.bf16.mxu1 %v750_v12  ;;  %v766_v29 = vld [vmem:[#allocation7 + $0x20] sm:$0xff]   ;;  %v108_v33 = vld [vmem:[%s1069_s2] sm:$0x3]  ;;  %v767_v51 = vld [vmem:[#allocation7 + $0x28] sm:$0xff]  }
  0x63   :  { %689 = vmatpush3.bf16.msra.mxu0 %v762_v24  ;;  %v113_v35 = vrot.slane %v108_v33, %v112_v32  ;;  %v117_v36 = vrot.slane %v108_v33, %v116_v34  ;;  %v768_v52 = vld [vmem:[#allocation7 + $0x30] sm:$0xff]   ;;  %v769_v53 = vld [vmem:[#allocation7 + $0x38] sm:$0xff]   ;;  %704 = vmatprep.mubr.msk.bf16.mxu0 %vm905_vm1, %v904_v25  ;;  %v770_v54 = vld [vmem:[#allocation9] sm:$0xff]  }
  0x64   :  { %690 = vmatprep.subr.bf16.mxu0 %v904_v25  ;;  %v771_v55 = vld [vmem:[#allocation9 + $0x8] sm:$0xff]   ;;  %v772_v56 = vld [vmem:[#allocation9 + $0x10] sm:$0xff]   ;;  %v773_v57 = vld [vmem:[#allocation9 + $0x18] sm:$0xff]  }
  0x65   :  { %653 = vmatpush3.bf16.msra.mxu1 %v751_v13  ;;  %v774_v58 = vld [vmem:[#allocation9 + $0x20] sm:$0xff]   ;;  %v775_v59 = vld [vmem:[#allocation9 + $0x28] sm:$0xff]   ;;  %v613_v61 = vld [vmem:[%s1071_s4] ss:$0 sm:$0xff] }
  0x66   :  { %654 = vmatprep.subr.bf16.mxu1 %v752_v14  ;;  %v776_v8 = vld [vmem:[#allocation9 + $0x30] sm:$0xff]   ;;  %v777_v9 = vld [vmem:[#allocation9 + $0x38] sm:$0xff]  }
  0x67   :  { %691 = vmatpush3.bf16.msra.mxu0 %v763_v26  ;;  %v630_v10 = vld [vmem:[%s1073_s6] ss:$0 sm:$0xff] }
  0x68   :  { %692 = vmatprep.subr.bf16.mxu0 %v904_v25 }
  0x69   :  { %655 = vmatpush3.bf16.msra.mxu1 %v753_v15 }
  0x6a   :  { %656 = vmatprep.subr.bf16.mxu1 %v754_v16 }
  0x6b   :  { %693 = vmatpush3.bf16.msra.mxu0 %v764_v27 }
  0x6c   :  { %694 = vmatprep.subr.bf16.mxu0 %v904_v25 }
  0x6d   :  { %657 = vmatpush3.bf16.msra.mxu1 %v755_v17 }
  0x6e   :  { %658 = vmatprep.subr.bf16.mxu1 %v756_v18 }
  0x6f   :  { %695 = vmatpush3.bf16.msra.mxu0 %v765_v28 }
  0x70   :  { %696 = vmatprep.subr.bf16.mxu0 %v904_v25 }
  0x71   :  { %659 = vmatpush3.bf16.msra.mxu1 %v757_v19 }
  0x72   :  { %660 = vmatprep.subr.bf16.mxu1 %v758_v20  ;;  %v639_v20 = vld [vmem:[%s1075_s8] ss:$0 sm:$0xff] }
  0x73   :  { %697 = vmatpush3.bf16.msra.mxu0 %v766_v29 }
  0x74   :  { %698 = vmatprep.subr.bf16.mxu0 %v904_v25 }
  0x75   :  { %661 = vmatpush3.bf16.msra.mxu1 %v759_v21 }
  0x76   :  { %662 = vmatprep.subr.bf16.mxu1 %v760_v22 }
  0x77   :  { %699 = vmatpush3.bf16.msra.mxu0 %v767_v51 }
  0x78   :  { %700 = vmatprep.subr.bf16.mxu0 %v904_v25 }
  0x79   :  { %663 = vmatpush3.bf16.msra.mxu1 %v761_v23 }
  0x7a   :  { %708 = vmatprep.subr.bf16.mxu1 %v904_v25 }
  0x7b   :  { %701 = vmatpush3.bf16.msra.mxu0 %v768_v52 }
  0x7c   :  { %702 = vmatprep.subr.bf16.mxu0 %v904_v25 }
  0x7f   :  { %703 = vmatpush3.bf16.msra.mxu0 %v769_v53 }
 0x135   :  { %v178_v37 = vpop.f32.mrb[0].mxu0 }
 0x136   :  { %v179_v38 = vadd.f32 %v178_v37, %v113_v35  ;;  %v180_v39 = vpop.f32.mrb[1].mxu0 }
 0x137   :  { %v181_v40 = vadd.f32 %v180_v39, %v117_v36  ;;  %v182_v41 = vpop.f32.mrb[2].mxu0 }
 0x138   :  { %v183_v42 = vadd.f32 %v182_v41, %v113_v35  ;;  %v184_v43 = vpop.f32.mrb[3].mxu0  ;;  %v187_v45 = vmax.f32 %v179_v38, 0.0 }
 0x139   :  { %v185_v44 = vadd.f32 %v184_v43, %v117_v36  ;;  %v188_v47 = vmax.f32 %v181_v40, 0.0 }
 0x13a   :  { %v189_v46 = vmax.f32 %v183_v42, 0.0 }
 0x13b   :  { %v190_v48 = vmax.f32 %v185_v44, 0.0 }
 0x13c   :  { %v191_v49 = vpack.c.bf16 %v189_v46, %v187_v45 }
 0x13d   :  { %v192_v50 = vpack.c.bf16 %v190_v48, %v188_v47 }
 0x13f   :  { %360 = vmatprep.mubr.bf16.mxu1 %v192_v50 }
 0x140   :  { %361 = vmatmul.mubr.bf16.vlgmr.msra.gmra.mrb[0].mxu1 %v191_v49 }
 0x141   :  { %724 = vmatprep.mubr.msk.bf16.mxu1 %vm905_vm1, %v904_v25  ;;  %709 = vmatpush3.bf16.msra.mxu1 %v770_v54 }
 0x142   :  { %710 = vmatprep.subr.bf16.mxu1 %v904_v25 }
 0x145   :  { %711 = vmatpush3.bf16.msra.mxu1 %v771_v55 }
 0x146   :  { %712 = vmatprep.subr.bf16.mxu1 %v904_v25 }
 0x149   :  { %713 = vmatpush3.bf16.msra.mxu1 %v772_v56 }
 0x14a   :  { %714 = vmatprep.subr.bf16.mxu1 %v904_v25 }
 0x14d   :  { %715 = vmatpush3.bf16.msra.mxu1 %v773_v57 }
 0x14e   :  { %716 = vmatprep.subr.bf16.mxu1 %v904_v25 }
 0x151   :  { %717 = vmatpush3.bf16.msra.mxu1 %v774_v58 }
 0x152   :  { %718 = vmatprep.subr.bf16.mxu1 %v904_v25 }
 0x155   :  { %719 = vmatpush3.bf16.msra.mxu1 %v775_v59 }
 0x156   :  { %720 = vmatprep.subr.bf16.mxu1 %v904_v25 }
 0x159   :  { %721 = vmatpush3.bf16.msra.mxu1 %v776_v8 }
 0x15a   :  { %722 = vmatprep.subr.bf16.mxu1 %v904_v25 }
 0x15d   :  { %723 = vmatpush3.bf16.msra.mxu1 %v777_v9 }
 0x213   :  { %v664_v60 = vpop.f32.mrb[0].mxu1 }
 0x214   :  { %v665_v62 = vpop.f32.mrb[1].mxu1 }
 0x215   :  { %v666_v63 = vadd.f32 %v665_v62, %v664_v60  ;;  %v667_v0 = vpop.f32.mrb[2].mxu1 }
 0x216   :  { %v668_v1 = vpop.f32.mrb[3].mxu1 }
 0x217   :  { %v363_v2 = vadd.f32 %v666_v63, %v613_v61  ;;  %v669_v3 = vadd.f32 %v668_v1, %v667_v0 }
 0x219   :  { %v366_v4 = vadd.f32 %v669_v3, %v613_v61  ;;  %v369_v5 = vmax.f32 %v363_v2, 0.0 }
 0x21b   :  { %v370_v6 = vmax.f32 %v366_v4, 0.0 }
 0x21d   :  { %v371_v7 = vpack.c.bf16 %v370_v6, %v369_v5 }
 0x21f   :  { %705 = vmatmul.mubr.bf16.vlgmr.msra.gmra.mrb[4].mxu0 %v371_v7 }
 0x2f2   :  { %v477_v11 = vpop.f32.mrb[4].mxu0 }
 0x2f3   :  { %v478_v12 = vadd.f32 %v630_v10, %v477_v11  ;;  %v706_v13 = vpop.f32.mrb[5].mxu0 }
 0x2f4   :  { %v480_v14 = vpop.f32.mrb[6].mxu0 }
 0x2f5   :  { %v481_v15 = vadd.f32 %v630_v10, %v480_v14  ;;  %v707_v16 = vpop.f32.mrb[7].mxu0  ;;  %v484_v17 = vmax.f32 %v478_v12, 0.0 }
 0x2f7   :  { %v485_v18 = vmax.f32 %v481_v15, 0.0 }
 0x2f9   :  { %v486_v19 = vpack.c.bf16 %v485_v18, %v484_v17 }
 0x2fb   :  { %725 = vmatmul.mubr.bf16.vlgmr.msra.gmra.mrb[4].mxu1 %v486_v19 }
 0x3ce   :  { %v592_v21 = vpop.f32.mrb[4].mxu1 }
 0x3cf   :  { %v593_v22 = vadd.f32 %v639_v20, %v592_v21  ;;  %v726_v23 = vpop.f32.mrb[5].mxu1 }
 0x3d0   :  { %v595_v24 = vpop.f32.mrb[6].mxu1 }
 0x3d1   :  { %599 = vst [vmem:[%s1076_s9] sm:$0xff] %v593_v22  ;;  %v596_v25 = vadd.f32 %v639_v20, %v595_v24  ;;  %v727_v26 = vpop.f32.mrb[7].mxu1 }
 0x3d3   :  { %600 = vst [vmem:[%s1076_s9 + $0x8] sm:$0xff] %v596_v25 }
 0x3d4   :  { %605 = vsyncpa [#allocation3], 1 }
 0x3d5   :  { %606 = vsyncpa [#allocation5], 1 }
 0x3d6   :  { %607 = vsyncpa [#allocation8], 1 }

</bundles_post_ra>
